<compile_context>
chip_gen: v6e
topology: v6e:2x2x1
jax: 0.10.0
libtpu: 0.0.40
codegen_flags: <defaults>
</compile_context>

<pallas_src>
import math

import jax
import jax.numpy as jnp
from jax.experimental import pallas as pl
from jax.experimental.pallas import tpu as pltpu

SQRT_HALF = math.sqrt(0.5)

# Double-buffered tile-data budget (conservative so the same tiling is safe on
# v7x's 64 MiB VMEM as well as v5e/v6e) and the scoped-VMEM limit we request.
_VMEM_DATA_BUDGET = 16 * 1024 * 1024
_VMEM_LIMIT_BYTES = 48 * 1024 * 1024


def _residual_linear_kernel(x_ref, res_ref, w_ref, o_ref):
    # res @ W on the MXU with f32 accumulation, fused residual add + sqrt(0.5).
    # NOTE: operands stay in their native dtype for exact parity with the
    # reference; casting res/W to bf16 is a further (lossy) option on v6e/v7x.
    proj = jnp.dot(res_ref[...], w_ref[...], preferred_element_type=jnp.float32)
    out = (x_ref[...].astype(jnp.float32) + proj) * SQRT_HALF
    o_ref[...] = out.astype(o_ref.dtype)


def _residual_add_kernel(x_ref, res_ref, o_ref):
    # Pure elementwise combine, computed in f32 for branch-consistent numerics.
    out = (x_ref[...].astype(jnp.float32) + res_ref[...].astype(jnp.float32)) * SQRT_HALF
    o_ref[...] = out.astype(o_ref.dtype)


def _pick_lane_width(total):
    """Largest lane-dense last dim (multiple of 128) that divides `total`."""
    for lane in (4096, 2048, 1024, 512, 256, 128):
        if total % lane == 0:
            return lane
    return None


def _row_tile(rows, bytes_per_tile_row, cap):
    """Largest row tile under the VMEM data budget (multiple of 8 or full)."""
    tm = min(rows, cap, max(1, _VMEM_DATA_BUDGET // max(1, bytes_per_tile_row)))
    if tm >= rows:
        return rows                      # full extent: always a legal block dim
    return max(8, (tm // 8) * 8)         # partial: keep sublane-aligned


def residual_forward(x, res, i, w):
    """x: [B, S, H]; res: [B, S, E] if i == 1 else [B, S, H]; i: python int.

    w: effective (weight-normed) linear weight stored as [E, H].
    The module's bias is structurally zero, so no bias is applied.
    """
    B, S, H = x.shape
    M = B * S
    itemsize = x.dtype.itemsize

    if i == 1:
        # ---- projection + residual combine (MXU path) ----
        E = res.shape[-1]
        x2 = x.reshape(M, H)
        res2 = res.reshape(M, E)

        # double-buffered bytes per tile-row: x(H) + res(E) + out(H), 2 buffers
        bytes_per_row = 2 * (2 * H + E) * itemsize
        tm = _row_tile(M, bytes_per_row, cap=512)
        grid = (pl.cdiv(M, tm),)

        out = pl.pallas_call(
            _residual_linear_kernel,
            out_shape=jax.ShapeDtypeStruct((M, H), x.dtype),
            grid_spec=pltpu.PrefetchScalarGridSpec(
                num_scalar_prefetch=0,
                grid=grid,
                in_specs=[
                    pl.BlockSpec((tm, H), lambda m: (m, 0)),   # x rows
                    pl.BlockSpec((tm, E), lambda m: (m, 0)),   # res rows
                    # Weight is resident (constant index_map); at typical E,H it
                    # is small relative to the row tiles, so the default
                    # buffering costs little VMEM even on v7x.
                    pl.BlockSpec((E, H), lambda m: (0, 0)),
                ],
                out_specs=pl.BlockSpec((tm, H), lambda m: (m, 0)),
            ),
            compiler_params=pltpu.CompilerParams(
                dimension_semantics=("parallel",),
                vmem_limit_bytes=_VMEM_LIMIT_BYTES),
        )(x2, res2, w)
        return out.reshape(B, S, H)

    # ---- i != 1: plain residual combine (elementwise, lane-dense layout) ----
    total = M * H
    lane = _pick_lane_width(total)
    if lane is None:
        rows, lane = M, H                # fallback: last dim = full array dim
    else:
        rows = total // lane

    x2 = x.reshape(rows, lane)
    res2 = res.reshape(rows, lane)

    # double-buffered bytes per tile-row: x + res + out, 2 buffers
    bytes_per_row = 2 * 3 * lane * itemsize
    tr = _row_tile(rows, bytes_per_row, cap=1024)
    grid = (pl.cdiv(rows, tr),)

    out = pl.pallas_call(
        _residual_add_kernel,
        out_shape=jax.ShapeDtypeStruct((rows, lane), x.dtype),
        grid_spec=pltpu.PrefetchScalarGridSpec(
            num_scalar_prefetch=0,
            grid=grid,
            in_specs=[
                pl.BlockSpec((tr, lane), lambda m: (m, 0)),
                pl.BlockSpec((tr, lane), lambda m: (m, 0)),
            ],
            out_specs=pl.BlockSpec((tr, lane), lambda m: (m, 0)),
        ),
        compiler_params=pltpu.CompilerParams(
            dimension_semantics=("parallel",),
            vmem_limit_bytes=_VMEM_LIMIT_BYTES),
    )(x2, res2)
    return out.reshape(B, S, H)


def init_linear_weight(key, embedding_dim, hidden_size):
    """Deterministic init matching the PyTorch module:
    nn.Linear weight ~ N(0, sqrt(1/in_features)), bias = 0, then weight_norm
    (g initialized to the per-row norm, so effective weight == v at init).
    Bias stays identically zero, so it is omitted from the kernel."""
    v = jax.random.normal(key, (hidden_size, embedding_dim), jnp.float32) * math.sqrt(
        1.0 / embedding_dim)
    norm = jnp.sqrt(jnp.sum(v * v, axis=1, keepdims=True))   # [H, 1]
    w_eff = norm * v / norm                                  # == v at init
    return w_eff.T                                            # store as [E, H]


if __name__ == "__main__":
    B, S, E, H = 2, 8, 32, 32  # embedding_dim = hidden_size = 32

    key = jax.random.PRNGKey(0)
    kx, kr, kw = jax.random.split(key, 3)
    x = jax.random.normal(kx, (B, S, H), jnp.float32)
    res = jax.random.normal(kr, (B, S, E), jnp.float32)
    w = init_linear_weight(kw, E, H)

    # i == 1 path: res goes through the weight-normed linear (zero bias)
    out1 = jax.block_until_ready(residual_forward(x, res, 1, w))
    ref1 = (x + (res.reshape(-1, E) @ w).reshape(B, S, H)) * SQRT_HALF
    assert jnp.allclose(out1, ref1, atol=1e-5, rtol=1e-5)

    # i != 1 path: plain residual combine
    out2 = jax.block_until_ready(residual_forward(x, res, 2, w))
    ref2 = (x + res) * SQRT_HALF
    assert jnp.allclose(out2, ref2, atol=1e-6, rtol=1e-6)

    print("KERNEL_OK")
</pallas_src>

<mosaic_0001>
module attributes {stable_mosaic.version = 11 : i64} {
  func.func @_residual_linear_kernel(%arg0: i32, %arg1: memref<16x32xf32, #tpu.memory_space<vmem>>, %arg2: memref<16x32xf32, #tpu.memory_space<vmem>>, %arg3: memref<32x32xf32, #tpu.memory_space<vmem>>, %arg4: memref<16x32xf32, #tpu.memory_space<vmem>>) attributes {dimension_semantics = [#tpu.dimension_semantics<parallel>], iteration_bounds = array<i64: 1>, scalar_prefetch = 0 : i64, scratch_operands = 0 : i64, tpu.core_type = #tpu.core_type<tc>, window_params = [{transform_indices = @transform_0, window_bounds = array<i64: 16, 32>}, {transform_indices = @transform_1, window_bounds = array<i64: 16, 32>}, {pipeline_mode = #tpu.pipeline_mode<synchronous>, transform_indices = @transform_2, window_bounds = array<i64: 32, 32>}, {transform_indices = @transform_3, window_bounds = array<i64: 16, 32>}]} {
    %c0 = arith.constant 0 : index
    %c0_0 = arith.constant 0 : index
    %0 = vector.load %arg2[%c0, %c0_0] : memref<16x32xf32, #tpu.memory_space<vmem>>, vector<16x32xf32>
    %c0_1 = arith.constant 0 : index
    %c0_2 = arith.constant 0 : index
    %1 = vector.load %arg3[%c0_1, %c0_2] : memref<32x32xf32, #tpu.memory_space<vmem>>, vector<32x32xf32>
    %cst = arith.constant dense<0.000000e+00> : vector<16x32xf32>
    %2 = tpu.matmul %0, %1, %cst {dimension_numbers = #tpu.dot_dimension_numbers<[1], [0], [0], [1], [0, 0, 1, 1], [], []>} : vector<16x32xf32>, vector<32x32xf32>, vector<16x32xf32> -> vector<16x32xf32>
    %c0_3 = arith.constant 0 : index
    %c0_4 = arith.constant 0 : index
    %3 = vector.load %arg1[%c0_3, %c0_4] : memref<16x32xf32, #tpu.memory_space<vmem>>, vector<16x32xf32>
    %4 = arith.addf %3, %2 : vector<16x32xf32>
    %cst_5 = arith.constant 0.707106769 : f32
    %5 = vector.broadcast %cst_5 : f32 to vector<16x32xf32>
    %6 = arith.mulf %4, %5 : vector<16x32xf32>
    %c0_6 = arith.constant 0 : index
    %c0_7 = arith.constant 0 : index
    %7 = vector.load %arg4[%c0_6, %c0_7] : memref<16x32xf32, #tpu.memory_space<vmem>>, vector<16x32xf32>
    tpu.vector_store %arg4[%c0_6, %c0_7], %6 {strides = array<i32>} : memref<16x32xf32, #tpu.memory_space<vmem>>, vector<16x32xf32>,
    return
  }
  func.func @transform_0(%arg0: i32) -> (i32, i32) {
    %c0_i32 = arith.constant 0 : i32
    %c0_i32_0 = arith.constant 0 : i32
    return %arg0, %c0_i32 : i32, i32
  }
  func.func @transform_1(%arg0: i32) -> (i32, i32) {
    %c0_i32 = arith.constant 0 : i32
    %c0_i32_0 = arith.constant 0 : i32
    return %arg0, %c0_i32 : i32, i32
  }
  func.func @transform_2(%arg0: i32) -> (i32, i32) {
    %c0_i32 = arith.constant 0 : i32
    %c0_i32_0 = arith.constant 0 : i32
    %c0_i32_1 = arith.constant 0 : i32
    return %c0_i32, %c0_i32_0 : i32, i32
  }
  func.func @transform_3(%arg0: i32) -> (i32, i32) {
    %c0_i32 = arith.constant 0 : i32
    %c0_i32_0 = arith.constant 0 : i32
    return %arg0, %c0_i32 : i32, i32
  }
}

</mosaic_0001>

<bundles_post_ra>
// kernel: tpu_custom_call.1
= control target key start
LH: loop header
LB: loop body
LE: loop exit
PB: predicated region body
PF: predicated region fallthrough
CT: control target
= control target key end

     0   :  { %8 = vsyncpa [#allocation3], 0  ;;  %s335_s0 = inlined_call_operand.hbm [shape: f32[16,32], index: 0, kind: input, shape index: {}]   ;;  %s336_s1 = inlined_call_operand.hbm [shape: f32[16,32], index: 1, kind: input, shape index: {}]   ;;  %s337_s2 = inlined_call_operand.hbm [shape: f32[32,32], index: 2, kind: input, shape index: {}]   ;;  %s338_s3 = inlined_call_operand.hbm [shape: f32[16,32], index: 3, kind: output, shape index: {}]  }
   0x1   :  { %9 = vsyncpa [#allocation6], 0 }
   0x2   :  { %10 = vsyncpa [#allocation4], 0  ;;  %s281_s12 = smov [#allocation5]   ;;  %s282_s14 = smov [#allocation2]  }
   0x3   :  { %s28_s13 = sshll.u32 %s281_s12, 4  ;;  %s16_s15 = sshll.u32 %s282_s14, 4  ;;  %s29_s13 = int_to_ptr.vmem [resolvable:$true] %s28_s13  ;;  %s17_s15 = int_to_ptr.vmem [resolvable:$true] %s16_s15 }
   0x4   :  { %s203_s16 = scalar_lea.vmem %s29_s13, 256  ;;  %p208_p1 = scmp.lt.s32.totalorder %s29_s13, %s29_s13 }
   0x5   :  { %p204_p0 = scmp.ne.s32.totalorder %s29_s13, %s203_s16  ;;  %p209_p2 = scmp.lt.s32.totalorder %s203_s16, %s203_s16 }
   0x7   :  { %p210_p3 = por %p209_p2, %p208_p1 }
   0x9   :  { %p211_p4 = pnand %p210_p3, %p204_p0 }
   0xb   :  { %214 = shalt.err (!%p211_p4)
}
   0xc   :  { %s283_s17 = smov 128   ;;  %s284_s18 = smov 8  }
   0xd   :  { %34 = dma.hbm_to_vmem [thread:$0]  %s336_s1, 256, %s29_s13, [#allocation6], %s283_s17, %s283_s17, %s284_s18  }
   0xe   :  { %s223_s21 = scalar_lea.vmem %s17_s15, 256  ;;  %p228_p6 = scmp.lt.s32.totalorder %s17_s15, %s17_s15 }
   0xf   :  { %p224_p5 = scmp.ne.s32.totalorder %s17_s15, %s223_s21  ;;  %p229_p7 = scmp.lt.s32.totalorder %s223_s21, %s223_s21 }
  0x11   :  { %p230_p8 = por %p229_p7, %p228_p6 }
  0x13   :  { %p231_p9 = pnand %p230_p8, %p224_p5 }
  0x15   :  { %234 = shalt.err (!%p231_p9)
}
  0x16   :  { %22 = dma.hbm_to_vmem [thread:$0]  %s335_s0, 256, %s17_s15, [#allocation3], %s283_s17, %s283_s17, %s284_s18  }
  0x17   :  { %s285_s24 = smov [#allocation7]  }
  0x18   :  { %s40_s25 = sshll.u32 %s285_s24, 4  ;;  %s41_s25 = int_to_ptr.vmem [resolvable:$true] %s40_s25 }
  0x19   :  { %s243_s26 = scalar_lea.vmem %s41_s25, 512  ;;  %p248_p11 = scmp.lt.s32.totalorder %s41_s25, %s41_s25 }
  0x1a   :  { %p244_p10 = scmp.ne.s32.totalorder %s41_s25, %s243_s26  ;;  %p249_p12 = scmp.lt.s32.totalorder %s243_s26, %s243_s26 }
  0x1c   :  { %p250_p13 = por %p249_p12, %p248_p11 }
  0x1e   :  { %p251_p0 = pnand %p250_p13, %p244_p10 }
  0x20   :  { %254 = shalt.err (!%p251_p0)
}
  0x21   :  { %46 = dma.hbm_to_vmem [thread:$0]  %s337_s2, 512, %s41_s25, [#allocation6], %s283_s17, %s283_s17, %s284_s18  }
  0x22   :  { %275 = dma.done.wait [#allocation3], 256  }
  0x23   :  { %276 = vsyncadd [#allocation3], 4294967040 }
  0x24   :  { %277 = dma.done.wait [#allocation6], 768  }
  0x25   :  { %278 = vsyncadd [#allocation6], 4294966528  ;;  %vm62_vm0 = vcmask 261120   ;;  %v61_v0 = vld [vmem:[#allocation7 + $0x18] sm:$0xff]  ;;  %v60_v1 = vld [vmem:[#allocation7 + $0x10] sm:$0xff]  ;;  %s286_s0 = smov [#allocation8]  }
  0x26   :  { %178 = vmatprep.subr.mxu0 %v61_v0  ;;  %v56_v2 = vld [vmem:[#allocation5] sm:$0xff]  ;;  %v59_v3 = vld [vmem:[#allocation7 + $0x8] sm:$0xff]  ;;  %v58_v4 = vld [vmem:[#allocation7] sm:$0xff]  ;;  %s157_s2 = sshll.u32 %s286_s0, 4  ;;  %s158_s2 = int_to_ptr.vmem [resolvable:$true] %s157_s2 }
  0x27   :  { %179 = vmatpush3.msra.mxu0 %v61_v0  ;;  %186 = vmatprep.mubr.msk.f32.mxu0 %vm62_vm0, %v56_v2  ;;  %v57_v5 = vld [vmem:[#allocation5 + $0x8] sm:$0xff]  ;;  %v145_v6 = vld [vmem:[#allocation2 + $0x8] sm:$0xff]  ;;  %v144_v8 = vld [vmem:[#allocation2] sm:$0xff]  ;;  %s255_s28 = scalar_lea.vmem %s158_s2, 256  ;;  %p260_p2 = scmp.lt.s32.totalorder %s158_s2, %s158_s2 }
  0x28   :  { %180 = vmatprep.subr.mxu0 %v60_v1  ;;  %p256_p1 = scmp.ne.s32.totalorder %s158_s2, %s255_s28  ;;  %p261_p3 = scmp.lt.s32.totalorder %s255_s28, %s255_s28 }
  0x29   :  { %181 = vmatpush3.msra.mxu0 %v60_v1 }
  0x2a   :  { %182 = vmatprep.subr.mxu0 %v59_v3  ;;  %p262_p4 = por %p261_p3, %p260_p2 }
  0x2b   :  { %183 = vmatpush3.msra.mxu0 %v59_v3 }
  0x2c   :  { %184 = vmatprep.subr.mxu0 %v58_v4  ;;  %p263_p5 = pnand %p262_p4, %p256_p1 }
  0x2d   :  { %185 = vmatpush3.msra.mxu0 %v58_v4 }
  0x2e   :  { %187 = vmatmul.mubr.msk.f32.vlgmr.msra.gmra.mxu0 %vm62_vm0, %v57_v5 }
  0xee   :  { %v188_v7 = vpop.f32.mrf.mxu0 }
  0xef   :  { %v147_v9 = vadd.f32 %v188_v7, %v145_v6 }
  0xf0   :  { %v135_v10 = vpop.f32.mrf.mxu0 }
  0xf1   :  { %v149_v11 = vmul.f32 0.70710677, %v147_v9  ;;  %v146_v12 = vadd.f32 %v144_v8, %v135_v10 }
  0xf3   :  { %151 = vst.msk [vmem:[#allocation8 + $0x8] sm:$0xff] %vm62_vm0, %v149_v11  ;;  %v148_v13 = vmul.f32 0.70710677, %v146_v12 }
  0xf5   :  { %150 = vst.msk [vmem:[#allocation8] sm:$0xff] %vm62_vm0, %v148_v13 }
  0xf6   :  { %266 = shalt.err (!%p263_p5)
}
  0xf7   :  { %163 = dma.vmem_to_hbm [thread:$0]  %s158_s2, 256, %s338_s3, [#allocation4], %s283_s17, %s283_s17, %s284_s18  }
  0xf8   :  { %279 = dma.done.wait [#allocation4], 256  }
  0xf9   :  { %280 = vsyncadd [#allocation4], 4294967040 }
  0xfa   :  { %167 = vsyncpa [#allocation3], 1 }
  0xfb   :  { %168 = vsyncpa [#allocation6], 1 }
  0xfc   :  { %169 = vsyncpa [#allocation4], 1 }

</bundles_post_ra>
